<compile_context>
chip_gen: v7x
topology: tpu7x:2x2x1
jax: 0.10.0
libtpu: 0.0.40
codegen_flags: <defaults>
</compile_context>

<pallas_src>
import numpy as np
import jax
import jax.numpy as jnp
from jax.experimental import pallas as pl
from jax.experimental.pallas import tpu as pltpu

# ----------------- configuration (GraphSPNNaiveCatG.__init__ args) -----------------
ND_N = 6          # nd_n : number of graph nodes
NK_N = 5          # nk_n : node categories
NK_E = 4          # nk_e : edge categories
NS   = 8          # ns   : num sums per inner region
NI   = 8          # ni   : num input distributions per leaf region
NL   = 2          # nl   : depth of the random binary trees
NR   = 2          # nr   : number of repetitions
NUM_CLASSES = 1   # EinsumNetwork default

ND_E = ND_N * (ND_N - 1) // 2          # 15 edge variables
ND   = ND_N + ND_E                     # 21 (num_var of the EinsumNetwork)
K    = max(NK_N, NK_E)                 # 5  (categorical K)
N_LEAF = 2 ** NL                       # leaf regions per repetition


def _round_up(x, m):
    return (x + m - 1) // m * m


# ----------------------------- random binary trees ---------------------------------
# TODO(synk): structural re-implementation of Graph.random_binary_trees /
# EinsumNetwork parameter init (the einet library internals are not available);
# tree topology and weight values are deterministic but not bit-identical to einet.
def build_random_binary_trees(nd, depth, repetitions, seed=0):
    rng = np.random.RandomState(seed)
    trees = []
    for _ in range(repetitions):
        regions = [list(int(v) for v in rng.permutation(nd))]
        for _ in range(depth):
            nxt = []
            for reg in regions:
                h = len(reg) // 2
                assert h >= 1, "binary tree too deep for the number of variables"
                nxt.append(reg[:h])
                nxt.append(reg[h:])
            regions = nxt
        trees.append(regions)          # trees[r] = list of 2**depth leaf-region var lists
    return trees


# ---------------------------------- parameters -------------------------------------
def init_params(key):
    k1, k2, k3 = jax.random.split(key, 3)

    # Categorical leaf parameters: log-softmax over K.
    theta_logits = 0.5 * jax.random.normal(k1, (ND, NR, NI, K), jnp.float32)
    log_theta = jax.nn.log_softmax(theta_logits, axis=-1)
    log_theta = jnp.swapaxes(log_theta, -1, -2)                 # [ND, NR, K, NI]

    # Einsum-layer weights: softmax over the (kin*kin) product index.
    w_layers = []
    keys = jax.random.split(k2, NL)
    for ell in range(NL):
        kin = NI if ell == 0 else NS
        n_nodes = 2 ** (NL - 1 - ell)
        logits = 0.5 * jax.random.normal(keys[ell], (NR, n_nodes, NS, kin * kin),
                                         jnp.float32)
        w = jax.nn.softmax(logits, axis=-1)
        w_layers.append(jnp.swapaxes(w, -1, -2))                # [NR, n_nodes, kin*kin, NS]

    # Root mixing layer over (sum, repetition) -> num_classes outputs.
    # TODO(synk): einet's exact (sum, repetition) ordering is not reproduced; a
    # self-consistent repetition-major ordering is used throughout.
    root_logits = 0.5 * jax.random.normal(k3, (NUM_CLASSES, NS * NR), jnp.float32)
    w_root = jnp.swapaxes(jax.nn.softmax(root_logits, axis=-1), 0, 1)   # [NS*NR, C]

    return {"log_theta": log_theta, "w_layers": w_layers, "w_root": w_root}


# --------------------- host-side constant (block) matrix construction ----------------
def build_constants(params, leaves):
    log_theta = np.asarray(params["log_theta"], dtype=np.float32)     # [ND, NR, K, NI]
    w_layers = [np.asarray(w, dtype=np.float32) for w in params["w_layers"]]
    w_root = np.asarray(params["w_root"], dtype=np.float32)           # [NS*NR, C]

    # Leaf block weight [ND*K, NR*N_LEAF*NI]: row (d,k), column (r,g,i) holds
    # log_theta[d,r,k,i] iff variable d belongs to leaf region g of repetition r.
    w_leaf = np.zeros((ND * K, NR * N_LEAF * NI), np.float32)
    for r in range(NR):
        assert len(leaves[r]) == N_LEAF
        for g, region in enumerate(leaves[r]):
            c0 = (r * N_LEAF + g) * NI
            for d in region:
                w_leaf[d * K:(d + 1) * K, c0:c0 + NI] = log_theta[d, r]   # [K, NI]

    consts = {"w_leaf": jnp.asarray(w_leaf),
              "w_root": jnp.asarray(w_root),
              "layers": []}

    for ell in range(NL):
        kin = NI if ell == 0 else NS
        n_in = 2 ** (NL - ell)             # input regions per repetition
        n_nodes = n_in // 2
        m_in = NR * n_in * kin             # packed input slab width
        m_pp = NR * n_nodes * kin * kin    # packed outer-product slab width
        m_out = NR * n_nodes * NS          # packed output slab width

        # Butterfly permutations for exact per-region (size kin) max broadcast.
        rounds = max(1, int(np.ceil(np.log2(kin))))
        prot = np.zeros((rounds, m_in, m_in), np.float32)
        for t in range(rounds):
            s = 1 << t
            for c in range(m_in):
                base = (c // kin) * kin
                prot[t, base + ((c % kin) + s) % kin, c] = 1.0

        gl = np.zeros((m_in, m_pp), np.float32)     # left-child "repeat" gather
        gr = np.zeros((m_in, m_pp), np.float32)     # right-child "tile" gather
        wbd = np.zeros((m_pp, m_out), np.float32)   # block-diagonal sum weights
        corr = np.zeros((m_in, m_out), np.float32)  # (lmax + rmax) gather
        w = w_layers[ell]                            # [NR, n_nodes, kin*kin, NS]
        for r in range(NR):
            for j in range(n_nodes):
                node = r * n_nodes + j
                loff = (r * n_in + 2 * j) * kin
                roff = (r * n_in + 2 * j + 1) * kin
                for p in range(kin):
                    for q in range(kin):
                        c = node * kin * kin + p * kin + q
                        gl[loff + p, c] = 1.0
                        gr[roff + q, c] = 1.0
                wbd[node * kin * kin:(node + 1) * kin * kin,
                    node * NS:(node + 1) * NS] = w[r, j]
                corr[loff, node * NS:(node + 1) * NS] = 1.0
                corr[roff, node * NS:(node + 1) * NS] = 1.0

        consts["layers"].append(tuple(jnp.asarray(m)
                                      for m in (prot, gl, gr, wbd, corr)))
    return consts


# --------------------------------- Pallas kernel ------------------------------------
def make_kernel(nl):
    def kernel(z_ref, wleaf_ref, *rest):
        layer_refs = [rest[5 * ell: 5 * ell + 5] for ell in range(nl)]
        wroot_ref = rest[5 * nl]
        o_ref = rest[5 * nl + 1]

        z = z_ref[...].astype(jnp.float32)               # [TB, ND*K] one-hot (exact)
        # Leaf layer: all (rep, region, input-dist) log-likelihoods in ONE matmul.
        slab = jnp.dot(z, wleaf_ref[...], preferred_element_type=jnp.float32)

        for ell in range(nl):
            prot_ref, gl_ref, gr_ref, wbd_ref, c_ref = layer_refs[ell]
            # Exact per-region max, broadcast to every lane of its region, via a
            # butterfly of within-region cyclic rotations (constant 0/1 matmuls).
            mb = slab
            for t in range(prot_ref.shape[0]):           # static trip count (3)
                mb = jnp.maximum(mb, jnp.dot(mb, prot_ref[t],
                                             preferred_element_type=jnp.float32))
            e = jnp.exp(slab - mb)                       # in (0, 1], each region has a 1.0
            # Lane-dense outer products for all (rep, node) pairs at once.
            el = jnp.dot(e, gl_ref[...], preferred_element_type=jnp.float32)
            er = jnp.dot(e, gr_ref[...], preferred_element_type=jnp.float32)
            prob = jnp.dot(el * er, wbd_ref[...], preferred_element_type=jnp.float32)
            corr = jnp.dot(mb, c_ref[...], preferred_element_type=jnp.float32)
            # prob >= min(weight) > 0, so the log is always finite.
            slab = jnp.log(prob) + corr                  # packed [TB, NR*n_nodes*NS]

        # Root mixture over (sum, repetition): single fused log-sum-exp matmul.
        mx = jnp.max(slab, axis=1, keepdims=True)        # [TB, 1]
        p = jnp.dot(jnp.exp(slab - mx), wroot_ref[...],
                    preferred_element_type=jnp.float32)  # [TB, C]
        o_ref[...] = jnp.log(p) + mx
    return kernel


def einsum_network_forward(z_flat, consts, tb):
    b_pad = z_flat.shape[0]
    const_arrs = [consts["w_leaf"]]
    for layer in consts["layers"]:
        const_arrs.extend(layer)
    const_arrs.append(consts["w_root"])

    in_specs = [pl.BlockSpec((tb, ND * K), lambda i: (i, 0))]
    for arr in const_arrs:
        # Full-extent blocks with constant index maps: parameters stay VMEM resident
        # across the batch grid (no per-step re-DMA).
        in_specs.append(pl.BlockSpec(tuple(arr.shape),
                                     lambda i, _n=arr.ndim: (0,) * _n))

    return pl.pallas_call(
        make_kernel(NL),
        out_shape=jax.ShapeDtypeStruct((b_pad, NUM_CLASSES), jnp.float32),
        grid=(b_pad // tb,),
        in_specs=in_specs,
        out_specs=pl.BlockSpec((tb, NUM_CLASSES), lambda i: (i, 0)),
        compiler_params=pltpu.CompilerParams(dimension_semantics=("parallel",)),
    )(z_flat, *const_arrs)


# ------------------------------ module forward (glue) -------------------------------
def to_categorical(x, a):
    # ohe2cat: argmax over the one-hot category axes
    x_cat = jnp.argmax(x, axis=2)                              # [B, nd_n]
    a_cat = jnp.argmax(a, axis=3)                              # [B, nd_n, nd_n]
    # strictly-lower-triangular entries in row-major order == a[tril_mask].view(-1, nd_e)
    tri_i, tri_j = np.tril_indices(ND_N, k=-1)
    l = a_cat[:, tri_i, tri_j]                                 # [B, nd_e]
    return jnp.concatenate([x_cat, l], axis=1)                 # [B, nd] categorical


def graphspn_forward(consts, x, a, block_b=512):
    B = x.shape[0]
    z = to_categorical(x, a)
    tb = _round_up(min(block_b, _round_up(B, 16)), 16)         # batch tile (bf16 sublanes)
    b_pad = _round_up(B, tb)
    if b_pad != B:
        # Padded rows become category-0 graphs: finite values, sliced off below.
        z = jnp.pad(z, ((0, b_pad - B), (0, 0)))
    # One-hot built directly in bf16 (exact 0/1): halves the only B-scaled DMA.
    z_flat = jax.nn.one_hot(z, K, dtype=jnp.bfloat16).reshape(b_pad, ND * K)
    out = einsum_network_forward(z_flat, consts, tb)
    return out[:B]


# ------------------------ pure-JAX reference (unconsolidated) ------------------------
def reference_forward(params, leaves, x, a):
    z = to_categorical(x, a)
    B = z.shape[0]
    z_oh = jax.nn.one_hot(z, K, dtype=jnp.float32)
    log_theta = params["log_theta"]
    vals = []
    for r in range(NR):
        rep = []
        for region in leaves[r]:
            acc = jnp.zeros((B, NI), jnp.float32)
            for d in region:
                acc = acc + z_oh[:, d, :] @ log_theta[d, r]
            rep.append(acc)
        vals.append(rep)
    for ell in range(NL):
        w = params["w_layers"][ell]
        new_vals = []
        for r in range(NR):
            rep = []
            for j in range(len(vals[r]) // 2):
                left, right = vals[r][2 * j], vals[r][2 * j + 1]
                kin = left.shape[1]
                lmax = jnp.max(left, axis=1, keepdims=True)
                rmax = jnp.max(right, axis=1, keepdims=True)
                outer = (jnp.exp(left - lmax)[:, :, None]
                         * jnp.exp(right - rmax)[:, None, :]).reshape(B, kin * kin)
                rep.append(jnp.log(outer @ w[r, j]) + lmax + rmax)
            new_vals.append(rep)
        vals = new_vals
    final = jnp.concatenate([vals[r][0] for r in range(NR)], axis=1)   # [B, NS*NR]
    mx = jnp.max(final, axis=1, keepdims=True)
    return jnp.log(jnp.exp(final - mx) @ params["w_root"]) + mx


# --------------------------------------- main ---------------------------------------
if __name__ == "__main__":
    B = 2
    key = jax.random.PRNGKey(0)
    kx, ka, kp = jax.random.split(key, 3)

    # deterministic one-hot inputs consistent with the module's expected shapes
    x_cat_in = jax.random.randint(kx, (B, ND_N), 0, NK_N)
    a_cat_in = jax.random.randint(ka, (B, ND_N, ND_N), 0, NK_E)
    x = jax.nn.one_hot(x_cat_in, NK_N, dtype=jnp.float32)      # [B, nd_n, nk_n]
    a = jax.nn.one_hot(a_cat_in, NK_E, dtype=jnp.float32)      # [B, nd_n, nd_n, nk_e]

    leaves = build_random_binary_trees(ND, NL, NR, seed=0)
    params = init_params(kp)
    consts = build_constants(params, leaves)

    out = graphspn_forward(consts, x, a)
    out = jax.block_until_ready(out)
    assert out.shape == (B, NUM_CLASSES)
    assert bool(jnp.all(jnp.isfinite(out)))

    # Cross-check the consolidated kernel against the unconsolidated pure-JAX math.
    # Tolerance is loose because XLA's default f32 matmul precision on TPU differs
    # from the in-kernel MXU path; structural errors would be off by >> 1 nat.
    ref = reference_forward(params, leaves, x, a)
    assert bool(jnp.allclose(out, ref, rtol=1e-2, atol=2e-2)), (out, ref)

    print("KERNEL_OK")
</pallas_src>

<mosaic_0001>
module attributes {stable_mosaic.version = 11 : i64} {
  func.func @kernel(%arg0: i32, %arg1: memref<16x105xbf16, #tpu.memory_space<vmem>>, %arg2: memref<105x64xf32, #tpu.memory_space<vmem>>, %arg3: memref<3x64x64xf32, #tpu.memory_space<vmem>>, %arg4: memref<64x256xf32, #tpu.memory_space<vmem>>, %arg5: memref<64x256xf32, #tpu.memory_space<vmem>>, %arg6: memref<256x32xf32, #tpu.memory_space<vmem>>, %arg7: memref<64x32xf32, #tpu.memory_space<vmem>>, %arg8: memref<3x32x32xf32, #tpu.memory_space<vmem>>, %arg9: memref<32x128xf32, #tpu.memory_space<vmem>>, %arg10: memref<32x128xf32, #tpu.memory_space<vmem>>, %arg11: memref<128x16xf32, #tpu.memory_space<vmem>>, %arg12: memref<32x16xf32, #tpu.memory_space<vmem>>, %arg13: memref<16x1xf32, #tpu.memory_space<vmem>>, %arg14: memref<16x1xf32, #tpu.memory_space<vmem>>) attributes {dimension_semantics = [#tpu.dimension_semantics<parallel>], iteration_bounds = array<i64: 1>, scalar_prefetch = 0 : i64, scratch_operands = 0 : i64, tpu.core_type = #tpu.core_type<tc>, window_params = [{transform_indices = @transform_0, window_bounds = array<i64: 16, 105>}, {pipeline_mode = #tpu.pipeline_mode<synchronous>, transform_indices = @transform_1, window_bounds = array<i64: 105, 64>}, {pipeline_mode = #tpu.pipeline_mode<synchronous>, transform_indices = @transform_2, window_bounds = array<i64: 3, 64, 64>}, {pipeline_mode = #tpu.pipeline_mode<synchronous>, transform_indices = @transform_3, window_bounds = array<i64: 64, 256>}, {pipeline_mode = #tpu.pipeline_mode<synchronous>, transform_indices = @transform_4, window_bounds = array<i64: 64, 256>}, {pipeline_mode = #tpu.pipeline_mode<synchronous>, transform_indices = @transform_5, window_bounds = array<i64: 256, 32>}, {pipeline_mode = #tpu.pipeline_mode<synchronous>, transform_indices = @transform_6, window_bounds = array<i64: 64, 32>}, {pipeline_mode = #tpu.pipeline_mode<synchronous>, transform_indices = @transform_7, window_bounds = array<i64: 3, 32, 32>}, {pipeline_mode = #tpu.pipeline_mode<synchronous>, transform_indices = @transform_8, window_bounds = array<i64: 32, 128>}, {pipeline_mode = #tpu.pipeline_mode<synchronous>, transform_indices = @transform_9, window_bounds = array<i64: 32, 128>}, {pipeline_mode = #tpu.pipeline_mode<synchronous>, transform_indices = @transform_10, window_bounds = array<i64: 128, 16>}, {pipeline_mode = #tpu.pipeline_mode<synchronous>, transform_indices = @transform_11, window_bounds = array<i64: 32, 16>}, {pipeline_mode = #tpu.pipeline_mode<synchronous>, transform_indices = @transform_12, window_bounds = array<i64: 16, 1>}, {transform_indices = @transform_13, window_bounds = array<i64: 16, 1>}]} {
    %c0 = arith.constant 0 : index
    %c0_0 = arith.constant 0 : index
    %0 = vector.load %arg1[%c0, %c0_0] : memref<16x105xbf16, #tpu.memory_space<vmem>>, vector<16x105xbf16>
    %1 = arith.extf %0 : vector<16x105xbf16> to vector<16x105xf32>
    %c0_1 = arith.constant 0 : index
    %c0_2 = arith.constant 0 : index
    %2 = vector.load %arg2[%c0_1, %c0_2] : memref<105x64xf32, #tpu.memory_space<vmem>>, vector<105x64xf32>
    %cst = arith.constant dense<0.000000e+00> : vector<16x64xf32>
    %3 = tpu.matmul %1, %2, %cst {dimension_numbers = #tpu.dot_dimension_numbers<[1], [0], [0], [1], [0, 0, 1, 1], [], []>} : vector<16x105xf32>, vector<105x64xf32>, vector<16x64xf32> -> vector<16x64xf32>
    %c0_3 = arith.constant 0 : index
    %c0_4 = arith.constant 0 : index
    %c0_5 = arith.constant 0 : index
    %4 = vector.load %arg3[%c0_3, %c0_4, %c0_5] : memref<3x64x64xf32, #tpu.memory_space<vmem>>, vector<1x64x64xf32>
    %5 = vector.shape_cast %4 : vector<1x64x64xf32> to vector<64x64xf32>
    %cst_6 = arith.constant dense<0.000000e+00> : vector<16x64xf32>
    %6 = tpu.matmul %3, %5, %cst_6 {dimension_numbers = #tpu.dot_dimension_numbers<[1], [0], [0], [1], [0, 0, 1, 1], [], []>} : vector<16x64xf32>, vector<64x64xf32>, vector<16x64xf32> -> vector<16x64xf32>
    %7 = arith.maximumf %3, %6 : vector<16x64xf32>
    %c1 = arith.constant 1 : index
    %c0_7 = arith.constant 0 : index
    %c0_8 = arith.constant 0 : index
    %8 = vector.load %arg3[%c1, %c0_7, %c0_8] : memref<3x64x64xf32, #tpu.memory_space<vmem>>, vector<1x64x64xf32>
    %9 = vector.shape_cast %8 : vector<1x64x64xf32> to vector<64x64xf32>
    %cst_9 = arith.constant dense<0.000000e+00> : vector<16x64xf32>
    %10 = tpu.matmul %7, %9, %cst_9 {dimension_numbers = #tpu.dot_dimension_numbers<[1], [0], [0], [1], [0, 0, 1, 1], [], []>} : vector<16x64xf32>, vector<64x64xf32>, vector<16x64xf32> -> vector<16x64xf32>
    %11 = arith.maximumf %7, %10 : vector<16x64xf32>
    %c2 = arith.constant 2 : index
    %c0_10 = arith.constant 0 : index
    %c0_11 = arith.constant 0 : index
    %12 = vector.load %arg3[%c2, %c0_10, %c0_11] : memref<3x64x64xf32, #tpu.memory_space<vmem>>, vector<1x64x64xf32>
    %13 = vector.shape_cast %12 : vector<1x64x64xf32> to vector<64x64xf32>
    %cst_12 = arith.constant dense<0.000000e+00> : vector<16x64xf32>
    %14 = tpu.matmul %11, %13, %cst_12 {dimension_numbers = #tpu.dot_dimension_numbers<[1], [0], [0], [1], [0, 0, 1, 1], [], []>} : vector<16x64xf32>, vector<64x64xf32>, vector<16x64xf32> -> vector<16x64xf32>
    %15 = arith.maximumf %11, %14 : vector<16x64xf32>
    %16 = arith.subf %3, %15 : vector<16x64xf32>
    %17 = math.exp %16 : vector<16x64xf32>
    %c0_13 = arith.constant 0 : index
    %c0_14 = arith.constant 0 : index
    %18 = vector.load %arg4[%c0_13, %c0_14] : memref<64x256xf32, #tpu.memory_space<vmem>>, vector<64x256xf32>
    %cst_15 = arith.constant dense<0.000000e+00> : vector<16x256xf32>
    %19 = tpu.matmul %17, %18, %cst_15 {dimension_numbers = #tpu.dot_dimension_numbers<[1], [0], [0], [1], [0, 0, 1, 1], [], []>} : vector<16x64xf32>, vector<64x256xf32>, vector<16x256xf32> -> vector<16x256xf32>
    %c0_16 = arith.constant 0 : index
    %c0_17 = arith.constant 0 : index
    %20 = vector.load %arg5[%c0_16, %c0_17] : memref<64x256xf32, #tpu.memory_space<vmem>>, vector<64x256xf32>
    %cst_18 = arith.constant dense<0.000000e+00> : vector<16x256xf32>
    %21 = tpu.matmul %17, %20, %cst_18 {dimension_numbers = #tpu.dot_dimension_numbers<[1], [0], [0], [1], [0, 0, 1, 1], [], []>} : vector<16x64xf32>, vector<64x256xf32>, vector<16x256xf32> -> vector<16x256xf32>
    %22 = arith.mulf %19, %21 : vector<16x256xf32>
    %c0_19 = arith.constant 0 : index
    %c0_20 = arith.constant 0 : index
    %23 = vector.load %arg6[%c0_19, %c0_20] : memref<256x32xf32, #tpu.memory_space<vmem>>, vector<256x32xf32>
    %cst_21 = arith.constant dense<0.000000e+00> : vector<16x32xf32>
    %24 = tpu.matmul %22, %23, %cst_21 {dimension_numbers = #tpu.dot_dimension_numbers<[1], [0], [0], [1], [0, 0, 1, 1], [], []>} : vector<16x256xf32>, vector<256x32xf32>, vector<16x32xf32> -> vector<16x32xf32>
    %c0_22 = arith.constant 0 : index
    %c0_23 = arith.constant 0 : index
    %25 = vector.load %arg7[%c0_22, %c0_23] : memref<64x32xf32, #tpu.memory_space<vmem>>, vector<64x32xf32>
    %cst_24 = arith.constant dense<0.000000e+00> : vector<16x32xf32>
    %26 = tpu.matmul %15, %25, %cst_24 {dimension_numbers = #tpu.dot_dimension_numbers<[1], [0], [0], [1], [0, 0, 1, 1], [], []>} : vector<16x64xf32>, vector<64x32xf32>, vector<16x32xf32> -> vector<16x32xf32>
    %27 = math.log %24 : vector<16x32xf32>
    %28 = arith.addf %27, %26 : vector<16x32xf32>
    %c0_25 = arith.constant 0 : index
    %c0_26 = arith.constant 0 : index
    %c0_27 = arith.constant 0 : index
    %29 = vector.load %arg8[%c0_25, %c0_26, %c0_27] : memref<3x32x32xf32, #tpu.memory_space<vmem>>, vector<1x32x32xf32>
    %30 = vector.shape_cast %29 : vector<1x32x32xf32> to vector<32x32xf32>
    %cst_28 = arith.constant dense<0.000000e+00> : vector<16x32xf32>
    %31 = tpu.matmul %28, %30, %cst_28 {dimension_numbers = #tpu.dot_dimension_numbers<[1], [0], [0], [1], [0, 0, 1, 1], [], []>} : vector<16x32xf32>, vector<32x32xf32>, vector<16x32xf32> -> vector<16x32xf32>
    %32 = arith.maximumf %28, %31 : vector<16x32xf32>
    %c1_29 = arith.constant 1 : index
    %c0_30 = arith.constant 0 : index
    %c0_31 = arith.constant 0 : index
    %33 = vector.load %arg8[%c1_29, %c0_30, %c0_31] : memref<3x32x32xf32, #tpu.memory_space<vmem>>, vector<1x32x32xf32>
    %34 = vector.shape_cast %33 : vector<1x32x32xf32> to vector<32x32xf32>
    %cst_32 = arith.constant dense<0.000000e+00> : vector<16x32xf32>
    %35 = tpu.matmul %32, %34, %cst_32 {dimension_numbers = #tpu.dot_dimension_numbers<[1], [0], [0], [1], [0, 0, 1, 1], [], []>} : vector<16x32xf32>, vector<32x32xf32>, vector<16x32xf32> -> vector<16x32xf32>
    %36 = arith.maximumf %32, %35 : vector<16x32xf32>
    %c2_33 = arith.constant 2 : index
    %c0_34 = arith.constant 0 : index
    %c0_35 = arith.constant 0 : index
    %37 = vector.load %arg8[%c2_33, %c0_34, %c0_35] : memref<3x32x32xf32, #tpu.memory_space<vmem>>, vector<1x32x32xf32>
    %38 = vector.shape_cast %37 : vector<1x32x32xf32> to vector<32x32xf32>
    %cst_36 = arith.constant dense<0.000000e+00> : vector<16x32xf32>
    %39 = tpu.matmul %36, %38, %cst_36 {dimension_numbers = #tpu.dot_dimension_numbers<[1], [0], [0], [1], [0, 0, 1, 1], [], []>} : vector<16x32xf32>, vector<32x32xf32>, vector<16x32xf32> -> vector<16x32xf32>
    %40 = arith.maximumf %36, %39 : vector<16x32xf32>
    %41 = arith.subf %28, %40 : vector<16x32xf32>
    %42 = math.exp %41 : vector<16x32xf32>
    %c0_37 = arith.constant 0 : index
    %c0_38 = arith.constant 0 : index
    %43 = vector.load %arg9[%c0_37, %c0_38] : memref<32x128xf32, #tpu.memory_space<vmem>>, vector<32x128xf32>
    %cst_39 = arith.constant dense<0.000000e+00> : vector<16x128xf32>
    %44 = tpu.matmul %42, %43, %cst_39 {dimension_numbers = #tpu.dot_dimension_numbers<[1], [0], [0], [1], [0, 0, 1, 1], [], []>} : vector<16x32xf32>, vector<32x128xf32>, vector<16x128xf32> -> vector<16x128xf32>
    %c0_40 = arith.constant 0 : index
    %c0_41 = arith.constant 0 : index
    %45 = vector.load %arg10[%c0_40, %c0_41] : memref<32x128xf32, #tpu.memory_space<vmem>>, vector<32x128xf32>
    %cst_42 = arith.constant dense<0.000000e+00> : vector<16x128xf32>
    %46 = tpu.matmul %42, %45, %cst_42 {dimension_numbers = #tpu.dot_dimension_numbers<[1], [0], [0], [1], [0, 0, 1, 1], [], []>} : vector<16x32xf32>, vector<32x128xf32>, vector<16x128xf32> -> vector<16x128xf32>
    %47 = arith.mulf %44, %46 : vector<16x128xf32>
    %c0_43 = arith.constant 0 : index
    %c0_44 = arith.constant 0 : index
    %48 = vector.load %arg11[%c0_43, %c0_44] : memref<128x16xf32, #tpu.memory_space<vmem>>, vector<128x16xf32>
    %cst_45 = arith.constant dense<0.000000e+00> : vector<16x16xf32>
    %49 = tpu.matmul %47, %48, %cst_45 {dimension_numbers = #tpu.dot_dimension_numbers<[1], [0], [0], [1], [0, 0, 1, 1], [], []>} : vector<16x128xf32>, vector<128x16xf32>, vector<16x16xf32> -> vector<16x16xf32>
    %c0_46 = arith.constant 0 : index
    %c0_47 = arith.constant 0 : index
    %50 = vector.load %arg12[%c0_46, %c0_47] : memref<32x16xf32, #tpu.memory_space<vmem>>, vector<32x16xf32>
    %cst_48 = arith.constant dense<0.000000e+00> : vector<16x16xf32>
    %51 = tpu.matmul %40, %50, %cst_48 {dimension_numbers = #tpu.dot_dimension_numbers<[1], [0], [0], [1], [0, 0, 1, 1], [], []>} : vector<16x32xf32>, vector<32x16xf32>, vector<16x16xf32> -> vector<16x16xf32>
    %52 = math.log %49 : vector<16x16xf32>
    %53 = arith.addf %52, %51 : vector<16x16xf32>
    %cst_49 = arith.constant dense<0xFF800000> : vector<16xf32>
    %54 = vector.multi_reduction <maximumf>, %53, %cst_49 [1] : vector<16x16xf32> to vector<16xf32>
    %55 = vector.shape_cast %54 : vector<16xf32> to vector<16x1xf32>
    %56 = vector.broadcast %55 : vector<16x1xf32> to vector<16x16xf32>
    %57 = arith.subf %53, %56 : vector<16x16xf32>
    %58 = math.exp %57 : vector<16x16xf32>
    %c0_50 = arith.constant 0 : index
    %c0_51 = arith.constant 0 : index
    %59 = vector.load %arg13[%c0_50, %c0_51] : memref<16x1xf32, #tpu.memory_space<vmem>>, vector<16x1xf32>
    %cst_52 = arith.constant dense<0.000000e+00> : vector<16x1xf32>
    %60 = tpu.matmul %58, %59, %cst_52 {dimension_numbers = #tpu.dot_dimension_numbers<[1], [0], [0], [1], [0, 0, 1, 1], [], []>} : vector<16x16xf32>, vector<16x1xf32>, vector<16x1xf32> -> vector<16x1xf32>
    %61 = math.log %60 : vector<16x1xf32>
    %62 = arith.addf %61, %55 : vector<16x1xf32>
    %c0_53 = arith.constant 0 : index
    %c0_54 = arith.constant 0 : index
    %63 = vector.load %arg14[%c0_53, %c0_54] : memref<16x1xf32, #tpu.memory_space<vmem>>, vector<16x1xf32>
    tpu.vector_store %arg14[%c0_53, %c0_54], %62 {strides = array<i32>} : memref<16x1xf32, #tpu.memory_space<vmem>>, vector<16x1xf32>,
    return
  }
  func.func @transform_0(%arg0: i32) -> (i32, i32) {
    %c0_i32 = arith.constant 0 : i32
    %c0_i32_0 = arith.constant 0 : i32
    return %arg0, %c0_i32 : i32, i32
  }
  func.func @transform_1(%arg0: i32) -> (i32, i32) {
    %c0_i32 = arith.constant 0 : i32
    %c0_i32_0 = arith.constant 0 : i32
    %c0_i32_1 = arith.constant 0 : i32
    return %c0_i32, %c0_i32_0 : i32, i32
  }
  func.func @transform_2(%arg0: i32) -> (i32, i32, i32) {
    %c0_i32 = arith.constant 0 : i32
    %c0_i32_0 = arith.constant 0 : i32
    %c0_i32_1 = arith.constant 0 : i32
    %c0_i32_2 = arith.constant 0 : i32
    return %c0_i32, %c0_i32_0, %c0_i32_1 : i32, i32, i32
  }
  func.func @transform_3(%arg0: i32) -> (i32, i32) {
    %c0_i32 = arith.constant 0 : i32
    %c0_i32_0 = arith.constant 0 : i32
    %c0_i32_1 = arith.constant 0 : i32
    return %c0_i32, %c0_i32_0 : i32, i32
  }
  func.func @transform_4(%arg0: i32) -> (i32, i32) {
    %c0_i32 = arith.constant 0 : i32
    %c0_i32_0 = arith.constant 0 : i32
    %c0_i32_1 = arith.constant 0 : i32
    return %c0_i32, %c0_i32_0 : i32, i32
  }
  func.func @transform_5(%arg0: i32) -> (i32, i32) {
    %c0_i32 = arith.constant 0 : i32
    %c0_i32_0 = arith.constant 0 : i32
    %c0_i32_1 = arith.constant 0 : i32
    return %c0_i32, %c0_i32_0 : i32, i32
  }
  func.func @transform_6(%arg0: i32) -> (i32, i32) {
    %c0_i32 = arith.constant 0 : i32
    %c0_i32_0 = arith.constant 0 : i32
    %c0_i32_1 = arith.constant 0 : i32
    return %c0_i32, %c0_i32_0 : i32, i32
  }
  func.func @transform_7(%arg0: i32) -> (i32, i32, i32) {
    %c0_i32 = arith.constant 0 : i32
    %c0_i32_0 = arith.constant 0 : i32
    %c0_i32_1 = arith.constant 0 : i32
    %c0_i32_2 = arith.constant 0 : i32
    return %c0_i32, %c0_i32_0, %c0_i32_1 : i32, i32, i32
  }
  func.func @transform_8(%arg0: i32) -> (i32, i32) {
    %c0_i32 = arith.constant 0 : i32
    %c0_i32_0 = arith.constant 0 : i32
    %c0_i32_1 = arith.constant 0 : i32
    return %c0_i32, %c0_i32_0 : i32, i32
  }
  func.func @transform_9(%arg0: i32) -> (i32, i32) {
    %c0_i32 = arith.constant 0 : i32
    %c0_i32_0 = arith.constant 0 : i32
    %c0_i32_1 = arith.constant 0 : i32
    return %c0_i32, %c0_i32_0 : i32, i32
  }
  func.func @transform_10(%arg0: i32) -> (i32, i32) {
    %c0_i32 = arith.constant 0 : i32
    %c0_i32_0 = arith.constant 0 : i32
    %c0_i32_1 = arith.constant 0 : i32
    return %c0_i32, %c0_i32_0 : i32, i32
  }
  func.func @transform_11(%arg0: i32) -> (i32, i32) {
    %c0_i32 = arith.constant 0 : i32
    %c0_i32_0 = arith.constant 0 : i32
    %c0_i32_1 = arith.constant 0 : i32
    return %c0_i32, %c0_i32_0 : i32, i32
  }
  func.func @transform_12(%arg0: i32) -> (i32, i32) {
    %c0_i32 = arith.constant 0 : i32
    %c0_i32_0 = arith.constant 0 : i32
    %c0_i32_1 = arith.constant 0 : i32
    return %c0_i32, %c0_i32_0 : i32, i32
  }
  func.func @transform_13(%arg0: i32) -> (i32, i32) {
    %c0_i32 = arith.constant 0 : i32
    %c0_i32_0 = arith.constant 0 : i32
    return %arg0, %c0_i32 : i32, i32
  }
}

</mosaic_0001>

<bundles_post_ra>
// kernel: tpu_custom_call.1
= control target key start
LH: loop header
LB: loop body
LE: loop exit
PB: predicated region body
PF: predicated region fallthrough
CT: control target
= control target key end

     0   :  { %vm62_vm0 = vcmask 859136   ;;  %vm69_vm1 = vcmask 1040384   ;;  %vm2247_vm2 = vmmov 1   ;;  %vm156_vm4 = vcmask 523264   ;;  %s2850_s1 = inlined_call_operand.vmem [shape: f32[105,64], index: 1, kind: input, shape index: {}]   ;;  %s2851_s0 = inlined_call_operand.vmem [shape: bf16[16,105], index: 0, kind: input, shape index: {}]   ;;  %s2852_s2 = inlined_call_operand.vmem [shape: f32[3,64,64], index: 2, kind: input, shape index: {}]   ;;  %s2853_s4 = inlined_call_operand.vmem [shape: f32[64,256], index: 4, kind: input, shape index: {}]   ;;  %s2854_s3 = inlined_call_operand.vmem [shape: f32[64,256], index: 3, kind: input, shape index: {}]   ;;  %s2855_s6 = inlined_call_operand.vmem [shape: f32[64,32], index: 6, kind: input, shape index: {}]   ;;  %s2856_s5 = inlined_call_operand.vmem [shape: f32[256,32], index: 5, kind: input, shape index: {}]   ;;  %s2857_s7 = inlined_call_operand.vmem [shape: f32[3,32,32], index: 7, kind: input, shape index: {}]   ;;  %s2858_s8 = inlined_call_operand.vmem [shape: f32[32,128], index: 8, kind: input, shape index: {}]   ;;  %s2859_s9 = inlined_call_operand.vmem [shape: f32[32,128], index: 9, kind: input, shape index: {}]   ;;  %s2860_s11 = inlined_call_operand.vmem [shape: f32[32,16], index: 11, kind: input, shape index: {}]   ;;  %s2861_s10 = inlined_call_operand.vmem [shape: f32[128,16], index: 10, kind: input, shape index: {}]   ;;  %s2862_s12 = inlined_call_operand.vmem [shape: f32[16,1], index: 12, kind: input, shape index: {}]   ;;  %s2863_s13 = inlined_call_operand.vmem [shape: f32[16,1], index: 13, kind: output, shape index: {}]  }
   0x1   :  { %v48_v0 = vld [vmem:[%s2850_s1] sm:$0xff]  ;;  %v49_v1 = vld [vmem:[%s2850_s1 + $0x8] sm:$0xff]  ;;  %v50_v2 = vld [vmem:[%s2850_s1 + $0x10] sm:$0xff]  ;;  %vm832_vm5 = vcmask 261120   ;;  %vm1446_vm6 = vcmask 130048   ;;  %vm1548_vm7 = vcmask 7168  }
   0x2   :  { %v1979_v3 = vpack.c.bf16 %v49_v1, %v48_v0  ;;  %v51_v4 = vld [vmem:[%s2850_s1 + $0x18] sm:$0xff]  ;;  %v52_v6 = vld [vmem:[%s2850_s1 + $0x20] sm:$0xff]  ;;  %v53_v7 = vld [vmem:[%s2850_s1 + $0x28] sm:$0xff] }
   0x3   :  { %v1983_v5 = vpack.c.bf16 %v51_v4, %v50_v2  ;;  %v54_v8 = vld [vmem:[%s2850_s1 + $0x30] sm:$0xff]  ;;  %v1987_v9 = vpack.c.bf16 %v53_v7, %v52_v6  ;;  %v1609_v10 = vld [vmem:[%s2851_s0] sm:$0xff]   ;;  %v149_v12 = vld [vmem:[%s2852_s2 + $0x8] sm:$0xff] }
   0x4   :  { %1980 = vmatprep.subr.bf16.mxu0 %v1979_v3  ;;  %v148_v11 = vld [vmem:[%s2852_s2] sm:$0xff]  ;;  %v55_v13 = vld [vmem:[%s2850_s1 + $0x38] sm:$0xff]  ;;  %v1610_v14 = vunpack.c.l.bf16 %v1609_v10  ;;  %v150_v16 = vld [vmem:[%s2852_s2 + $0x10] sm:$0xff]  ;;  %v1611_v35 = vunpack.c.h.bf16 %v1609_v10 }
   0x5   :  { %1982 = vmatpush3.bf16.msra.mxu0 %v1979_v3  ;;  %v2009_v15 = vpack.c.bf16 %v149_v12, %v148_v11  ;;  %v151_v17 = vld [vmem:[%s2852_s2 + $0x18] sm:$0xff]  ;;  %v152_v19 = vld [vmem:[%s2852_s2 + $0x20] sm:$0xff]  ;;  %v153_v20 = vld [vmem:[%s2852_s2 + $0x28] sm:$0xff]  ;;  %v1991_v21 = vpack.c.bf16 %v55_v13, %v54_v8 }
   0x6   :  { %1984 = vmatprep.subr.bf16.mxu0 %v1983_v5  ;;  %v2013_v18 = vpack.c.bf16 %v151_v17, %v150_v16  ;;  %1792 = vmatprep.mubr.msk.f32.mxu0 %vm62_vm0, %v1610_v14  ;;  %v56_v22 = vld [vmem:[%s2850_s1 + $0x40] sm:$0xff]  ;;  %v57_v23 = vld [vmem:[%s2850_s1 + $0x48] sm:$0xff]  ;;  %v2017_v24 = vpack.c.bf16 %v153_v20, %v152_v19  ;;  %v154_v25 = vld [vmem:[%s2852_s2 + $0x30] sm:$0xff] }
   0x7   :  { %2010 = vmatprep.subr.bf16.mxu1 %v2009_v15  ;;  %v155_v26 = vld [vmem:[%s2852_s2 + $0x38] sm:$0xff]  ;;  %v1995_v27 = vpack.c.bf16 %v57_v23, %v56_v22  ;;  %v58_v28 = vld [vmem:[%s2850_s1 + $0x50] sm:$0xff]  ;;  %v60_v32 = vld [vmem:[%s2850_s1 + $0x60] sm:$0xff] }
   0x8   :  { %2012 = vmatpush3.bf16.msra.mxu1 %v2009_v15  ;;  %v59_v29 = vld [vmem:[%s2850_s1 + $0x58] sm:$0xff]  ;;  %v2021_v30 = vpack.c.bf16 %v155_v26, %v154_v25  ;;  %v61_v33 = vld [vmem:[%s2850_s1 + $0x68] sm:$0x1]  ;;  %vm2004_vm3 = vmpackc.low %vm69_vm1, %vm2247_vm2 }
   0x9   :  { %1986 = vmatpush3.bf16.msra.mxu0 %v1983_v5  ;;  %2014 = vmatprep.subr.bf16.mxu1 %v2013_v18  ;;  %v1999_v31 = vpack.c.bf16 %v59_v29, %v58_v28  ;;  %v2003_v34 = vpack.c.bf16 %v61_v33, %v60_v32  ;;  %v1560_v36 = vld [vmem:[%s2852_s2 + $0x40] sm:$0xff]  ;;  %v1561_v37 = vld [vmem:[%s2852_s2 + $0x48] sm:$0xff]  ;;  %v1562_v39 = vld [vmem:[%s2852_s2 + $0x50] sm:$0xff] }
   0xa   :  { %1988 = vmatprep.subr.bf16.mxu0 %v1987_v9  ;;  %v2025_v38 = vpack.c.bf16 %v1561_v37, %v1560_v36  ;;  %v1563_v40 = vld [vmem:[%s2852_s2 + $0x58] sm:$0xff]  ;;  %v1564_v44 = vld [vmem:[%s2852_s2 + $0x60] sm:$0xff]  ;;  %v1565_v45 = vld [vmem:[%s2852_s2 + $0x68] sm:$0xff] }
   0xb   :  { %v2029_v43 = vpack.c.bf16 %v1563_v40, %v1562_v39  ;;  %v2033_v46 = vpack.c.bf16 %v1565_v45, %v1564_v44  ;;  %v1566_v47 = vld [vmem:[%s2852_s2 + $0x70] sm:$0xff]  ;;  %v1567_v48 = vld [vmem:[%s2852_s2 + $0x78] sm:$0xff]  ;;  %v1570_v50 = vld [vmem:[%s2852_s2 + $0x80] sm:$0xff]  ;;  %v2248_v40 = vmov 0.0  }
   0xc   :  { %2016 = vmatpush3.bf16.msra.mxu1 %v2013_v18  ;;  %v2037_v49 = vpack.c.bf16 %v1567_v48, %v1566_v47  ;;  %v1571_v51 = vld [vmem:[%s2852_s2 + $0x88] sm:$0xff]  ;;  %v1572_v52 = vld [vmem:[%s2852_s2 + $0x90] sm:$0xff]  ;;  %v1573_v54 = vld [vmem:[%s2852_s2 + $0x98] sm:$0xff] }
   0xd   :  { %1990 = vmatpush3.bf16.msra.mxu0 %v1987_v9  ;;  %2018 = vmatprep.subr.bf16.mxu1 %v2017_v24  ;;  %v2041_v53 = vpack.c.bf16 %v1571_v51, %v1570_v50  ;;  %v2045_v55 = vpack.c.bf16 %v1573_v54, %v1572_v52  ;;  %v1574_v56 = vld [vmem:[%s2852_s2 + $0xa0] sm:$0xff]  ;;  %v1575_v57 = vld [vmem:[%s2852_s2 + $0xa8] sm:$0xff]  ;;  %v1576_v63 = vld [vmem:[%s2852_s2 + $0xb0] sm:$0xff] }
   0xe   :  { %1992 = vmatprep.subr.bf16.mxu0 %v1991_v21  ;;  %v2049_v58 = vpack.c.bf16 %v1575_v57, %v1574_v56  ;;  %v1577_v0 = vld [vmem:[%s2852_s2 + $0xb8] sm:$0xff]  ;;  %v530_v6 = vld [vmem:[%s2853_s4 + $0x8] sm:$0xff]  ;;  %v529_v11 = vld [vmem:[%s2853_s4] sm:$0xff] }
   0xf   :  { %v2053_v1 = vpack.c.bf16 %v1577_v0, %v1576_v63  ;;  %v532_v7 = vld [vmem:[%s2853_s4 + $0x18] sm:$0xff]  ;;  %v431_v9 = vld [vmem:[%s2854_s3 + $0x8] sm:$0xff]  ;;  %v531_v13 = vld [vmem:[%s2853_s4 + $0x10] sm:$0xff] }
  0x10   :  { %2020 = vmatpush3.bf16.msra.mxu1 %v2017_v24  ;;  %v2073_v8 = vpack.c.bf16 %v532_v7, %v530_v6  ;;  %v433_v10 = vld [vmem:[%s2854_s3 + $0x18] sm:$0xff]  ;;  %v430_v14 = vld [vmem:[%s2854_s3] sm:$0xff]  ;;  %v432_v15 = vld [vmem:[%s2854_s3 + $0x10] sm:$0xff]  ;;  %v2075_v16 = vpack.c.bf16 %v531_v13, %v529_v11 }
  0x11   :  { %1994 = vmatpush3.bf16.msra.mxu0 %v1991_v21  ;;  %2022 = vmatprep.subr.bf16.mxu1 %v2021_v30  ;;  %v2057_v12 = vpack.c.bf16 %v433_v10, %v431_v9  ;;  %v2059_v17 = vpack.c.bf16 %v432_v15, %v430_v14  ;;  %v534_v18 = vld [vmem:[%s2853_s4 + $0x28] sm:$0xff]  ;;  %v536_v19 = vld [vmem:[%s2853_s4 + $0x38] sm:$0xff]  ;;  %v533_v23 = vld [vmem:[%s2853_s4 + $0x20] sm:$0xff] }
  0x12   :  { %1996 = vmatprep.subr.bf16.mxu0 %v1995_v27  ;;  %v2077_v20 = vpack.c.bf16 %v536_v19, %v534_v18  ;;  %v435_v21 = vld [vmem:[%s2854_s3 + $0x28] sm:$0xff]  ;;  %v437_v22 = vld [vmem:[%s2854_s3 + $0x38] sm:$0xff]  ;;  %v535_v25 = vld [vmem:[%s2853_s4 + $0x30] sm:$0xff] }
  0x13   :  { %v2061_v24 = vpack.c.bf16 %v437_v22, %v435_v21  ;;  %v434_v26 = vld [vmem:[%s2854_s3 + $0x20] sm:$0xff]  ;;  %v2079_v28 = vpack.c.bf16 %v535_v25, %v533_v23  ;;  %v439_v33 = vld [vmem:[%s2854_s3 + $0x48] sm:$0xff]  ;;  %v539_v37 = vld [vmem:[%s2853_s4 + $0x50] sm:$0xff] }
  0x14   :  { %2024 = vmatpush3.bf16.msra.mxu1 %v2021_v30  ;;  %v538_v30 = vld [vmem:[%s2853_s4 + $0x48] sm:$0xff]  ;;  %v440_v39 = vld [vmem:[%s2854_s3 + $0x50] sm:$0xff]  ;;  %v541_v50 = vld [vmem:[%s2853_s4 + $0x60] sm:$0xff] }
  0x15   :  { %1998 = vmatpush3.bf16.msra.mxu0 %v1995_v27  ;;  %2026 = vmatprep.subr.bf16.mxu1 %v2025_v38  ;;  %v436_v27 = vld [vmem:[%s2854_s3 + $0x30] sm:$0xff]  ;;  %v542_v45 = vld [vmem:[%s2853_s4 + $0x68] sm:$0xff]  ;;  %v442_v54 = vld [vmem:[%s2854_s3 + $0x60] sm:$0xff] }
  0x16   :  { %2000 = vmatprep.subr.bf16.mxu0 %v1999_v31  ;;  %v2063_v29 = vpack.c.bf16 %v436_v27, %v434_v26  ;;  %v443_v47 = vld [vmem:[%s2854_s3 + $0x68] sm:$0xff]  ;;  %v543_v51 = vld [vmem:[%s2853_s4 + $0x70] sm:$0xff]  ;;  %v733_v56 = vld [vmem:[%s2855_s6] sm:$0xff] }
  0x17   :  { %v735_v9 = vld [vmem:[%s2855_s6 + $0x10] sm:$0xff]  ;;  %v737_v10 = vld [vmem:[%s2855_s6 + $0x20] sm:$0xff]  ;;  %v645_v15 = vld [vmem:[%s2856_s5 + $0x98] sm:$0xff] }
  0x18   :  { %v644_v14 = vld [vmem:[%s2856_s5 + $0x90] sm:$0xff]  ;;  %v646_v18 = vld [vmem:[%s2856_s5 + $0xa0] sm:$0xff]  ;;  %v647_v19 = vld [vmem:[%s2856_s5 + $0xa8] sm:$0xff] }
  0x19   :  { %2002 = vmatpush3.bf16.msra.mxu0 %v1999_v31  ;;  %v540_v31 = vld [vmem:[%s2853_s4 + $0x58] sm:$0xff]  ;;  %v2093_v21 = vpack.c.bf16 %v645_v15, %v644_v14  ;;  %v739_v23 = vld [vmem:[%s2855_s6 + $0x30] sm:$0xff]  ;;  %v2097_v26 = vpack.c.bf16 %v647_v19, %v646_v18  ;;  %v630_v27 = vld [vmem:[%s2856_s5 + $0x20] sm:$0xff] }
  0x1a   :  { %2005 = vmatprep.subr.msk.bf16.mxu0 %vm2004_vm3, %v2003_v34  ;;  %v2081_v32 = vpack.c.bf16 %v540_v31, %v538_v30  ;;  %v649_v30 = vld [vmem:[%s2856_s5 + $0xb8] sm:$0xff]  ;;  %v830_v14 = vld [vmem:[%s2857_s7 + $0x10] sm:$0xff]  ;;  %v1589_v18 = vld [vmem:[%s2857_s7 + $0x28] sm:$0xff] }
  0x1b   :  { %v831_v15 = vld [vmem:[%s2857_s7 + $0x18] sm:$0xff] }
  0x1d   :  { %2008 = vmatpush3.bf16.msk.msra.mxu0 %vm2004_vm3, %v2003_v34  ;;  %v441_v34 = vld [vmem:[%s2854_s3 + $0x58] sm:$0xff] }
  0x1e   :  { %2042 = vmatprep.subr.bf16.mxu0 %v2041_v53  ;;  %v2065_v36 = vpack.c.bf16 %v441_v34, %v439_v33  ;;  %v632_v34 = vld [vmem:[%s2856_s5 + $0x30] sm:$0xff] }
  0x20   :  { %1793 = vmatmul.mubr.msk.f32.vlgmr.msra.gmra.mrb[0].mxu0 %vm62_vm0, %v1611_v35  ;;  %v537_v35 = vld [vmem:[%s2853_s4 + $0x40] sm:$0xff] }
  0x21   :  { %2044 = vmatpush3.bf16.msra.mxu0 %v2041_v53  ;;  %v2087_v53 = vpack.c.bf16 %v543_v51, %v541_v50  ;;  %v654_v50 = vld [vmem:[%s2856_s5 + $0xe0] sm:$0xff]  ;;  %v655_v51 = vld [vmem:[%s2856_s5 + $0xe8] sm:$0xff] }
  0x22   :  { %2046 = vmatprep.subr.bf16.mxu0 %v2045_v55 }
  0x25   :  { %2048 = vmatpush3.bf16.msra.mxu0 %v2045_v55  ;;  %v444_v55 = vld [vmem:[%s2854_s3 + $0x70] sm:$0xff] }
  0x26   :  { %2050 = vmatprep.subr.bf16.mxu0 %v2049_v58  ;;  %v2071_v57 = vpack.c.bf16 %v444_v55, %v442_v54  ;;  %v638_v54 = vld [vmem:[%s2856_s5 + $0x60] sm:$0xff]  ;;  %v639_v55 = vld [vmem:[%s2856_s5 + $0x68] sm:$0xff] }
  0x29   :  { %2052 = vmatpush3.bf16.msra.mxu0 %v2049_v58  ;;  %v734_v58 = vld [vmem:[%s2855_s6 + $0x8] sm:$0xff] }
  0x2a   :  { %2054 = vmatprep.subr.bf16.mxu0 %v2053_v1 }
  0x2d   :  { %2056 = vmatpush3.bf16.msra.mxu0 %v2053_v1 }
  0x2e   :  { %2074 = vmatprep.subr.bf16.mxu0 %v2073_v8 }
  0xf3   :  { %v2402_v41 = vpop.f32.mrb[0].mxu0 }
  0xf4   :  { %v2404_v42 = vpop.f32.mrb[1].mxu0 }
  0xf5   :  { %1811 = vmatprep.mubr.msk.f32.mxu1 %vm156_vm4, %v2404_v42 }
  0xf6   :  { %1812 = vmatmul.mubr.msk.f32.vlgmr.msra.gmra.mrb[0].mxu1 %vm156_vm4, %v2402_v41 }
  0xf7   :  { %2028 = vmatpush3.bf16.msra.mxu1 %v2025_v38  ;;  %v438_v38 = vld [vmem:[%s2854_s3 + $0x40] sm:$0xff] }
  0xf8   :  { %2030 = vmatprep.subr.bf16.mxu1 %v2029_v43  ;;  %v2067_v44 = vpack.c.bf16 %v440_v39, %v438_v38 }
  0xfb   :  { %2032 = vmatpush3.bf16.msra.mxu1 %v2029_v43  ;;  %v2083_v43 = vpack.c.bf16 %v539_v37, %v537_v35  ;;  %v633_v35 = vld [vmem:[%s2856_s5 + $0x38] sm:$0xff]  ;;  %v651_v37 = vld [vmem:[%s2856_s5 + $0xc8] sm:$0xff] }
  0xfc   :  { %2034 = vmatprep.subr.bf16.mxu1 %v2033_v46  ;;  %v2103_v38 = vpack.c.bf16 %v633_v35, %v632_v34  ;;  %v1594_v35 = vld [vmem:[%s2857_s7 + $0x40] sm:$0xff] }
  0xff   :  { %2036 = vmatpush3.bf16.msra.mxu1 %v2033_v46  ;;  %v544_v46 = vld [vmem:[%s2853_s4 + $0x78] sm:$0xff] }
 0x100   :  { %2038 = vmatprep.subr.bf16.mxu1 %v2037_v49  ;;  %v2085_v48 = vpack.c.bf16 %v544_v46, %v542_v45  ;;  %v653_v45 = vld [vmem:[%s2856_s5 + $0xd8] sm:$0xff] }
 0x103   :  { %2040 = vmatpush3.bf16.msra.mxu1 %v2037_v49  ;;  %v445_v49 = vld [vmem:[%s2854_s3 + $0x78] sm:$0xff] }
 0x104   :  { %2058 = vmatprep.subr.bf16.mxu1 %v2057_v12  ;;  %v2069_v52 = vpack.c.bf16 %v445_v49, %v443_v47  ;;  %v738_v12 = vld [vmem:[%s2855_s6 + $0x28] sm:$0xff]  ;;  %v637_v49 = vld [vmem:[%s2856_s5 + $0x58] sm:$0xff] }
 0x1c9   :  { %v1813_v59 = vpop.f32.mrb[0].mxu1 }
 0x1ca   :  { %v239_v60 = vmax.f32 %v2402_v41, %v1813_v59  ;;  %v229_v61 = vpop.f32.mrb[1].mxu1  ;;  %v2121_v59 = vpack.c.bf16 %v734_v58, %v733_v56  ;;  %v2115_v56 = vpack.c.bf16 %v639_v55, %v638_v54  ;;  %v657_v58 = vld [vmem:[%s2856_s5 + $0xf8] sm:$0xff]  ;;  %v1184_v55 = vld [vmem:[%s2859_s9 + $0x8] sm:$0xff] }
 0x1cb   :  { %v238_v62 = vmax.f32 %v2404_v42, %v229_v61  ;;  %v643_v61 = vld [vmem:[%s2856_s5 + $0x88] sm:$0xff] }
 0x1cd   :  { %1830 = vmatprep.mubr.msk.f32.mxu1 %vm156_vm4, %v238_v62 }
 0x1ce   :  { %1831 = vmatmul.mubr.msk.f32.vlgmr.msra.gmra.mrb[2].mxu1 %vm156_vm4, %v239_v60 }
 0x1cf   :  { %2060 = vmatpush1.bf16.msra.mxu1 %v2059_v17  ;;  %516 = vmatprep.mubr.f32.mxu1 %v2248_v40  ;;  %v629_v17 = vld [vmem:[%s2856_s5 + $0x18] sm:$0xff] }
 0x1d0   :  { %2062 = vmatprep.subr.bf16.mxu1 %v2061_v24  ;;  %v740_v24 = vld [vmem:[%s2855_s6 + $0x38] sm:$0xff] }
 0x1d1   :  { %v2133_v31 = vpack.c.bf16 %v740_v24, %v739_v23 }
 0x1d3   :  { %2064 = vmatpush1.bf16.msra.mxu1 %v2063_v29  ;;  %v648_v29 = vld [vmem:[%s2856_s5 + $0xb0] sm:$0xff] }
 0x1d4   :  { %2066 = vmatprep.subr.bf16.mxu1 %v2065_v36  ;;  %v2101_v33 = vpack.c.bf16 %v649_v30, %v648_v29  ;;  %v650_v36 = vld [vmem:[%s2856_s5 + $0xc0] sm:$0xff] }
 0x1d5   :  { %v2105_v39 = vpack.c.bf16 %v651_v37, %v650_v36  ;;  %v1595_v36 = vld [vmem:[%s2857_s7 + $0x48] sm:$0xff] }
 0x1d6   :  { %v2153_v37 = vpack.c.bf16 %v1595_v36, %v1594_v35  ;;  %v1279_v35 = vld [vmem:[%s2861_s10 + $0x78] sm:$0xff] }
 0x1d7   :  { %2068 = vmatpush1.bf16.msra.mxu1 %v2067_v44  ;;  %v652_v44 = vld [vmem:[%s2856_s5 + $0xd0] sm:$0xff] }
 0x1d8   :  { %2070 = vmatprep.subr.bf16.mxu1 %v2069_v52  ;;  %v2109_v47 = vpack.c.bf16 %v653_v45, %v652_v44  ;;  %v1596_v44 = vld [vmem:[%s2857_s7 + $0x50] sm:$0xff]  ;;  %v1597_v45 = vld [vmem:[%s2857_s7 + $0x58] sm:$0xff] }
 0x1db   :  { %2072 = vmatpush1.bf16.msra.mxu1 %v2071_v57  ;;  %v656_v57 = vld [vmem:[%s2856_s5 + $0xf0] sm:$0xff] }
 0x2a1   :  { %v1832_v2 = vpop.f32.mrb[2].mxu1 }
 0x2a2   :  { %v321_v3 = vpop.f32.mrb[3].mxu1  ;;  %v2452_v5 = vmax.f32 %v239_v60, %v1832_v2  ;;  %v642_v60 = vld [vmem:[%s2856_s5 + $0x80] sm:$0xff] }
 0x2a3   :  { %v2450_v4 = vmax.f32 %v238_v62, %v321_v3  ;;  %v2089_v62 = vpack.c.bf16 %v643_v61, %v642_v60  ;;  %v640_v60 = vld [vmem:[%s2856_s5 + $0x70] sm:$0xff]  ;;  %v641_v61 = vld [vmem:[%s2856_s5 + $0x78] sm:$0xff] }
 0x2a5   :  { %1849 = vmatprep.mubr.msk.f32.mxu0 %vm156_vm4, %v2450_v4  ;;  %2090 = vmatprep.subr.bf16.mxu1 %v2089_v62  ;;  %v2119_v62 = vpack.c.bf16 %v641_v61, %v640_v60  ;;  %v1185_v60 = vld [vmem:[%s2859_s9 + $0x10] sm:$0xff]  ;;  %v1186_v61 = vld [vmem:[%s2859_s9 + $0x18] sm:$0xff] }
 0x2a6   :  { %1850 = vmatmul.mubr.msk.f32.vlgmr.msra.gmra.mrb[2].mxu0 %vm156_vm4, %v2452_v5 }
 0x2a7   :  { %2076 = vmatpush1.bf16.msra.mxu0 %v2075_v16  ;;  %609 = vmatprep.mubr.f32.mxu0 %v2248_v40  ;;  %v628_v16 = vld [vmem:[%s2856_s5 + $0x10] sm:$0xff] }
 0x2a8   :  { %2078 = vmatprep.subr.bf16.mxu0 %v2077_v20  ;;  %v2129_v20 = vpack.c.bf16 %v738_v12, %v737_v10  ;;  %v2095_v25 = vpack.c.bf16 %v629_v17, %v628_v16  ;;  %v829_v12 = vld [vmem:[%s2857_s7 + $0x8] sm:$0xff]  ;;  %v2141_v16 = vpack.c.bf16 %v831_v15, %v830_v14  ;;  %v1588_v17 = vld [vmem:[%s2857_s7 + $0x20] sm:$0xff]  ;;  %v1267_v14 = vld [vmem:[%s2861_s10 + $0x18] sm:$0xff] }
 0x2a9   :  { %v2145_v19 = vpack.c.bf16 %v1589_v18, %v1588_v17 }
 0x2ab   :  { %2080 = vmatpush1.bf16.msra.mxu0 %v2079_v28  ;;  %v631_v28 = vld [vmem:[%s2856_s5 + $0x28] sm:$0xff] }
 0x2ac   :  { %2082 = vmatprep.subr.bf16.mxu0 %v2081_v32  ;;  %v2099_v32 = vpack.c.bf16 %v631_v28, %v630_v27 }
 0x2af   :  { %2084 = vmatpush1.bf16.msra.mxu0 %v2083_v43  ;;  %v635_v43 = vld [vmem:[%s2856_s5 + $0x48] sm:$0xff] }
 0x2b0   :  { %2086 = vmatprep.subr.bf16.mxu0 %v2085_v48  ;;  %v636_v48 = vld [vmem:[%s2856_s5 + $0x50] sm:$0xff] }
 0x2b1   :  { %v2111_v52 = vpack.c.bf16 %v637_v49, %v636_v48 }
 0x2b3   :  { %2088 = vmatpush1.bf16.msra.mxu0 %v2087_v53  ;;  %v2113_v53 = vpack.c.bf16 %v655_v51, %v654_v50  ;;  %v1098_v51 = vld [vmem:[%s2858_s8] sm:$0xff] }
 0x2b4   :  { %2122 = vmatprep.subr.bf16.mxu0 %v2121_v59 }
 0x379   :  { %v1851_v63 = vpop.f32.mrb[2].mxu0 }
 0x37a   :  { %v2569_v0 = vmax.f32 %v2452_v5, %v1851_v63  ;;  %v413_v1 = vpop.f32.mrb[3].mxu0  ;;  %v736_v5 = vld [vmem:[%s2855_s6 + $0x18] sm:$0xff] }
 0x37b   :  { %v422_v2 = vmax.f32 %v2450_v4, %v413_v1  ;;  %v626_v4 = vld [vmem:[%s2856_s5] sm:$0xff] }
 0x37c   :  { %v425_v3 = vsub.f32 %v2402_v41, %v2569_v0  ;;  %v627_v41 = vld [vmem:[%s2856_s5 + $0x8] sm:$0xff] }
 0x37d   :  { %v424_v6 = vsub.f32 %v2404_v42, %v422_v2  ;;  %v2125_v42 = vpack.c.bf16 %v736_v5, %v735_v9  ;;  %v2091_v13 = vpack.c.bf16 %v627_v41, %v626_v4 }
 0x37e   :  { %v428_v8 = vmul.f32 1.442695, %v425_v3 }
 0x37f   :  { %v426_v7 = vmul.f32 1.442695, %v424_v6 }
 0x381   :  { %2223 = vpow2.f32 %v426_v7 }
 0x382   :  { %2225 = vpow2.f32 %v428_v8 }
 0x38b   :  { %v2224_v11 = vpop.eup %2223 }
 0x38c   :  { %1580 = vmatmul.mubr.msk.f32.vlgmr.msra.gmra.mrb[4].mxu1 %vm156_vm4, %v2224_v11  ;;  %1582 = vmatmul.mubr.msk.f32.vlgmr.msra.gmra.mrb[4].mxu0 %vm156_vm4, %v2224_v11  ;;  %v2226_v22 = vpop.eup %2225  ;;  %v828_v11 = vld [vmem:[%s2857_s7] sm:$0xff] }
 0x38d   :  { %2124 = vmatpush3.bf16.msra.mxu0 %v2121_v59  ;;  %522 = vmatprep.mubr.f32.mxu1 %v2248_v40  ;;  %v2117_v59 = vpack.c.bf16 %v657_v58, %v656_v57  ;;  %v1101_v57 = vld [vmem:[%s2858_s8 + $0x18] sm:$0xff] }
 0x38e   :  { %615 = vmatprep.mubr.f32.mxu0 %v2248_v40  ;;  %2126 = vmatprep.subr.bf16.mxu0 %v2125_v42  ;;  %v634_v40 = vld [vmem:[%s2856_s5 + $0x40] sm:$0xff] }
 0x38f   :  { %2092 = vmatpush3.bf16.msra.mxu1 %v2091_v13  ;;  %v2107_v46 = vpack.c.bf16 %v635_v43, %v634_v40  ;;  %v2137_v13 = vpack.c.bf16 %v829_v12, %v828_v11  ;;  %v1357_v11 = vld [vmem:[%s2860_s11 + $0x10] sm:$0xff]  ;;  %v1358_v12 = vld [vmem:[%s2860_s11 + $0x18] sm:$0xff] }
 0x390   :  { %1581 = vmatmul.mubr.msk.f32.gmra.mrb[6].mxu1 %vm156_vm4, %v2226_v22  ;;  %1583 = vmatmul.mubr.msk.f32.gmra.mrb[6].mxu0 %vm156_vm4, %v2226_v22 }
 0x391   :  { %2128 = vmatpush3.bf16.msra.mxu0 %v2125_v42  ;;  %1868 = vmatprep.mubr.msk.f32.mxu0 %vm156_vm4, %v422_v2 }
 0x392   :  { %2130 = vmatprep.subr.bf16.mxu0 %v2129_v20  ;;  %2094 = vmatprep.subr.bf16.mxu1 %v2093_v21 }
 0x393   :  { %2096 = vmatpush3.bf16.msra.mxu1 %v2095_v25 }
 0x394   :  { %2098 = vmatprep.subr.bf16.mxu1 %v2097_v26 }
 0x395   :  { %2132 = vmatpush3.bf16.msra.mxu0 %v2129_v20 }
 0x396   :  { %2134 = vmatprep.subr.bf16.mxu0 %v2133_v31 }
 0x397   :  { %2100 = vmatpush3.bf16.msra.mxu1 %v2099_v32  ;;  %v1590_v32 = vld [vmem:[%s2857_s7 + $0x30] sm:$0xff] }
 0x398   :  { %2102 = vmatprep.subr.bf16.mxu1 %v2101_v33  ;;  %v1591_v33 = vld [vmem:[%s2857_s7 + $0x38] sm:$0xff] }
 0x399   :  { %2136 = vmatpush3.bf16.msra.mxu0 %v2133_v31  ;;  %v2149_v34 = vpack.c.bf16 %v1591_v33, %v1590_v32  ;;  %v1277_v32 = vld [vmem:[%s2861_s10 + $0x68] sm:$0xff] }
 0x39a   :  { %2138 = vmatprep.subr.bf16.mxu0 %v2137_v13 }
 0x39b   :  { %2104 = vmatpush3.bf16.msra.mxu1 %v2103_v38 }
 0x39c   :  { %1869 = vmatmul.mubr.msk.f32.vlgmr.msra.gmra.mrb[8].mxu0 %vm156_vm4, %v2569_v0  ;;  %2106 = vmatprep.subr.bf16.mxu1 %v2105_v39 }
 0x39d   :  { %2140 = vmatpush3.bf16.msra.mxu0 %v2137_v13  ;;  %v1266_v13 = vld [vmem:[%s2861_s10 + $0x10] sm:$0xff] }
 0x39e   :  { %2142 = vmatprep.subr.bf16.mxu0 %v2141_v16  ;;  %v2181_v18 = vpack.c.bf16 %v1267_v14, %v1266_v13 }
 0x39f   :  { %2108 = vmatpush3.bf16.msra.mxu1 %v2107_v46  ;;  %v2157_v46 = vpack.c.bf16 %v1597_v45, %v1596_v44 }
 0x3a0   :  { %2110 = vmatprep.subr.bf16.mxu1 %v2109_v47 }
 0x3a1   :  { %2144 = vmatpush3.bf16.msra.mxu0 %v2141_v16  ;;  %v2213_v16 = vpack.c.bf16 %v1358_v12, %v1357_v11 }
 0x3a2   :  { %2146 = vmatprep.subr.bf16.mxu0 %v2145_v19 }
 0x3a3   :  { %2112 = vmatpush3.bf16.msra.mxu1 %v2111_v52  ;;  %v1099_v52 = vld [vmem:[%s2858_s8 + $0x8] sm:$0xff] }
 0x3a4   :  { %2114 = vmatprep.subr.bf16.mxu1 %v2113_v53  ;;  %v1183_v53 = vld [vmem:[%s2859_s9] sm:$0xff]  ;;  %v2161_v54 = vpack.c.bf16 %v1099_v52, %v1098_v51 }
 0x3a5   :  { %v2169_v58 = vpack.c.bf16 %v1184_v55, %v1183_v53 }
 0x3a7   :  { %2116 = vmatpush3.bf16.msra.mxu1 %v2115_v56  ;;  %v1100_v56 = vld [vmem:[%s2858_s8 + $0x10] sm:$0xff] }
 0x3a8   :  { %2118 = vmatprep.subr.bf16.mxu1 %v2117_v59  ;;  %v2165_v59 = vpack.c.bf16 %v1101_v57, %v1100_v56  ;;  %v1459_v57 = vld [vmem:[%s2862_s12] sm:$0xff] }
 0x3ab   :  { %2120 = vmatpush3.bf16.msra.mxu1 %v2119_v62  ;;  %v2173_v62 = vpack.c.bf16 %v1186_v61, %v1185_v60 }
 0x3ac   :  { %2162 = vmatprep.subr.bf16.mxu1 %v2161_v54 }
 0x45f   :  { %v518_v63 = vpop.f32.mrb[4].mxu1  ;;  %v611_v0 = vpop.f32.mrb[4].mxu0 }
 0x460   :  { %v622_v1 = vmul.f32 %v611_v0, %v518_v63  ;;  %v520_v2 = vpop.f32.mrb[5].mxu1  ;;  %v613_v3 = vpop.f32.mrb[5].mxu0  ;;  %v1355_v63 = vld [vmem:[%s2860_s11] sm:$0xff]  ;;  %v1356_v0 = vld [vmem:[%s2860_s11 + $0x8] sm:$0xff] }
 0x461   :  { %v623_v6 = vmul.f32 %v613_v3, %v520_v2  ;;  %v1264_v2 = vld [vmem:[%s2861_s10] sm:$0xff]  ;;  %v1265_v3 = vld [vmem:[%s2861_s10 + $0x8] sm:$0xff] }
 0x463   :  { %v524_v7 = vpop.f32.mrb[6].mxu1  ;;  %v617_v8 = vpop.f32.mrb[6].mxu0  ;;  %722 = vmatprep.mubr.f32.mxu1 %v623_v6  ;;  %v2177_v6 = vpack.c.bf16 %v1265_v3, %v1264_v2 }
 0x464   :  { %v624_v9 = vmul.f32 %v617_v8, %v524_v7  ;;  %v526_v5 = vpop.f32.mrb[7].mxu1  ;;  %v619_v4 = vpop.f32.mrb[7].mxu0  ;;  %723 = vmatmul.mubr.f32.vlgmr.msra.gmra.mrb[8].mxu1 %v622_v1  ;;  %v2209_v1 = vpack.c.bf16 %v1356_v0, %v1355_v63 }
 0x465   :  { %v625_v41 = vmul.f32 %v619_v4, %v526_v5  ;;  %2164 = vmatpush3.bf16.msra.mxu1 %v2161_v54 }
 0x466   :  { %2166 = vmatprep.subr.bf16.mxu1 %v2165_v59 }
 0x467   :  { %727 = vmatprep.mubr.f32.mxu1 %v625_v41 }
 0x468   :  { %728 = vmatmul.mubr.f32.gmra.mrb[10].mxu1 %v624_v9 }
 0x469   :  { %2168 = vmatpush3.bf16.msra.mxu1 %v2165_v59 }
 0x46a   :  { %2178 = vmatprep.subr.bf16.mxu1 %v2177_v6 }
 0x46f   :  { %v1870_v42 = vpop.f32.mrb[8].mxu0 }
 0x470   :  { %v813_v10 = vpop.f32.mrb[9].mxu0 }
 0x537   :  { %v1690_v20 = vpop.f32.mrb[8].mxu1 }
 0x538   :  { %v1691_v21 = vpop.f32.mrb[9].mxu1 }
 0x539   :  { %v1692_v22 = vadd.f32 %v1691_v21, %v1690_v20  ;;  %v1269_v20 = vld [vmem:[%s2861_s10 + $0x28] sm:$0xff] }
 0x53b   :  { %2227 = vlog2.f32 %v1692_v22  ;;  %v1693_v23 = vpop.f32.mrb[10].mxu1  ;;  %v1270_v22 = vld [vmem:[%s2861_s10 + $0x30] sm:$0xff] }
 0x53c   :  { %v1694_v24 = vpop.f32.mrb[11].mxu1 }
 0x53d   :  { %v1695_v25 = vadd.f32 %v1694_v24, %v1693_v23  ;;  %v1271_v23 = vld [vmem:[%s2861_s10 + $0x38] sm:$0xff] }
 0x53e   :  { %v2189_v24 = vpack.c.bf16 %v1271_v23, %v1270_v22 }
 0x53f   :  { %2229 = vlog2.f32 %v1695_v25  ;;  %v1272_v25 = vld [vmem:[%s2861_s10 + $0x40] sm:$0xff] }
 0x545   :  { %v2228_v26 = vpop.eup %2227 }
 0x546   :  { %v823_v27 = vmul.f32 0.6931472, %v2228_v26  ;;  %v1273_v26 = vld [vmem:[%s2861_s10 + $0x48] sm:$0xff] }
 0x548   :  { %v2710_v28 = vadd.f32 %v823_v27, %v813_v10  ;;  %v2193_v27 = vpack.c.bf16 %v1273_v26, %v1272_v25 }
 0x549   :  { %v2230_v29 = vpop.eup %2229 }
 0x54a   :  { %v825_v30 = vmul.f32 0.6931472, %v2230_v29  ;;  %1879 = vmatprep.mubr.msk.f32.mxu0 %vm832_vm5, %v2710_v28  ;;  %v1275_v29 = vld [vmem:[%s2861_s10 + $0x58] sm:$0xff] }
 0x54c   :  { %v2714_v31 = vadd.f32 %v1870_v42, %v825_v30 }
 0x54e   :  { %1880 = vmatmul.mubr.msk.f32.vlgmr.msra.gmra.mrb[10].mxu0 %vm832_vm5, %v2714_v31 }
 0x54f   :  { %2148 = vmatpush3.bf16.msra.mxu0 %v2145_v19  ;;  %v1268_v19 = vld [vmem:[%s2861_s10 + $0x20] sm:$0xff] }
 0x550   :  { %2150 = vmatprep.subr.bf16.mxu0 %v2149_v34  ;;  %v2185_v21 = vpack.c.bf16 %v1269_v20, %v1268_v19 }
 0x553   :  { %2152 = vmatpush3.bf16.msra.mxu0 %v2149_v34  ;;  %v1278_v34 = vld [vmem:[%s2861_s10 + $0x70] sm:$0xff] }
 0x554   :  { %2154 = vmatprep.subr.bf16.mxu0 %v2153_v37  ;;  %v2205_v36 = vpack.c.bf16 %v1279_v35, %v1278_v34 }
 0x621   :  { %v1881_v38 = vpop.f32.mrb[10].mxu0 }
 0x622   :  { %v905_v39 = vpop.f32.mrb[11].mxu0  ;;  %v915_v43 = vmax.f32 %v2714_v31, %v1881_v38 }
 0x623   :  { %v914_v40 = vmax.f32 %v2710_v28, %v905_v39 }
 0x625   :  { %1890 = vmatprep.mubr.msk.f32.mxu0 %vm832_vm5, %v914_v40 }
 0x626   :  { %1891 = vmatmul.mubr.msk.f32.vlgmr.msra.gmra.mrb[12].mxu0 %vm832_vm5, %v915_v43 }
 0x627   :  { %2156 = vmatpush3.bf16.msra.mxu0 %v2153_v37 }
 0x628   :  { %2158 = vmatprep.subr.bf16.mxu0 %v2157_v46 }
 0x62b   :  { %2160 = vmatpush3.bf16.msra.mxu0 %v2157_v46 }
 0x62c   :  { %2170 = vmatprep.subr.bf16.mxu0 %v2169_v58 }
 0x6f9   :  { %v1892_v47 = vpop.f32.mrb[12].mxu0 }
 0x6fa   :  { %v993_v48 = vpop.f32.mrb[13].mxu0  ;;  %v1003_v50 = vmax.f32 %v915_v43, %v1892_v47 }
 0x6fb   :  { %v1002_v49 = vmax.f32 %v914_v40, %v993_v48 }
 0x6fd   :  { %1901 = vmatprep.mubr.msk.f32.mxu0 %vm832_vm5, %v1002_v49 }
 0x6fe   :  { %1902 = vmatmul.mubr.msk.f32.vlgmr.msra.gmra.mrb[14].mxu0 %vm832_vm5, %v1003_v50 }
 0x6ff   :  { %2172 = vmatpush3.bf16.msra.mxu0 %v2169_v58  ;;  %v1460_v58 = vld [vmem:[%s2862_s12 + $0x8] sm:$0xff] }
 0x700   :  { %2174 = vmatprep.subr.bf16.mxu0 %v2173_v62  ;;  %v2217_v59 = vpack.c.bf16 %v1460_v58, %v1459_v57 }
 0x703   :  { %2176 = vmatpush3.bf16.msra.mxu0 %v2173_v62 }
 0x704   :  { %2210 = vmatprep.subr.bf16.mxu0 %v2209_v1 }
 0x7d1   :  { %v1903_v7 = vpop.f32.mrb[14].mxu0 }
 0x7d2   :  { %v1091_v8 = vmax.f32 %v1003_v50, %v1903_v7  ;;  %v1081_v9 = vpop.f32.mrb[15].mxu0 }
 0x7d3   :  { %v1090_v5 = vmax.f32 %v1002_v49, %v1081_v9 }
 0x7d4   :  { %v1093_v4 = vsub.f32 %v2714_v31, %v1091_v8  ;;  %v1276_v31 = vld [vmem:[%s2861_s10 + $0x60] sm:$0xff] }
 0x7d5   :  { %v1092_v41 = vsub.f32 %v2710_v28, %v1090_v5  ;;  %v1274_v28 = vld [vmem:[%s2861_s10 + $0x50] sm:$0xff]  ;;  %v2201_v33 = vpack.c.bf16 %v1277_v32, %v1276_v31 }
 0x7d6   :  { %v1096_v42 = vmul.f32 1.442695, %v1093_v4  ;;  %v2197_v30 = vpack.c.bf16 %v1275_v29, %v1274_v28 }
 0x7d7   :  { %v1094_v10 = vmul.f32 1.442695, %v1092_v41 }
 0x7d9   :  { %2231 = vpow2.f32 %v1094_v10 }
 0x7da   :  { %2233 = vpow2.f32 %v1096_v42 }
 0x7e3   :  { %v2232_v15 = vpop.eup %2231 }
 0x7e4   :  { %v2234_v17 = vpop.eup %2233  ;;  %1912 = vmatprep.mubr.msk.f32.mxu1 %vm832_vm5, %v2232_v15  ;;  %1923 = vmatprep.mubr.msk.f32.mxu0 %vm832_vm5, %v2232_v15 }
 0x7e5   :  { %1913 = vmatmul.mubr.msk.f32.vlgmr.msra.gmra.mrb[12].mxu1 %vm832_vm5, %v2234_v17  ;;  %1924 = vmatmul.mubr.msk.f32.vlgmr.msra.gmra.mrb[16].mxu0 %vm832_vm5, %v2234_v17 }
 0x7e6   :  { %2212 = vmatpush3.bf16.msra.mxu0 %v2209_v1  ;;  %1969 = vmatprep.mubr.msk.f32.mxu0 %vm832_vm5, %v1090_v5 }
 0x7e7   :  { %2214 = vmatprep.subr.bf16.mxu0 %v2213_v16  ;;  %2180 = vmatpush3.bf16.msra.mxu1 %v2177_v6 }
 0x7e8   :  { %2182 = vmatprep.subr.bf16.mxu1 %v2181_v18 }
 0x7ea   :  { %2216 = vmatpush3.bf16.msra.mxu0 %v2213_v16 }
 0x7eb   :  { %2184 = vmatpush3.bf16.msra.mxu1 %v2181_v18  ;;  %2218 = vmatprep.subr.bf16.mxu0 %v2217_v59 }
 0x7ec   :  { %2186 = vmatprep.subr.bf16.mxu1 %v2185_v21 }
 0x7ed   :  { %1970 = vmatmul.mubr.msk.f32.vlgmr.msra.gmra.mrb[18].mxu0 %vm832_vm5, %v1091_v8 }
 0x7ee   :  { %2220 = vmatpush3.bf16.msra.mxu0 %v2217_v59 }
 0x7ef   :  { %2188 = vmatpush3.bf16.msra.mxu1 %v2185_v21 }
 0x7f0   :  { %2190 = vmatprep.subr.bf16.mxu1 %v2189_v24 }
 0x7f3   :  { %2192 = vmatpush3.bf16.msra.mxu1 %v2189_v24 }
 0x7f4   :  { %2194 = vmatprep.subr.bf16.mxu1 %v2193_v27 }
 0x7f7   :  { %2196 = vmatpush3.bf16.msra.mxu1 %v2193_v27 }
 0x7f8   :  { %2198 = vmatprep.subr.bf16.mxu1 %v2197_v30 }
 0x7fb   :  { %2200 = vmatpush3.bf16.msra.mxu1 %v2197_v30 }
 0x7fc   :  { %2202 = vmatprep.subr.bf16.mxu1 %v2201_v33 }
 0x7ff   :  { %2204 = vmatpush3.bf16.msra.mxu1 %v2201_v33 }
 0x800   :  { %2206 = vmatprep.subr.bf16.mxu1 %v2205_v36 }
 0x803   :  { %2208 = vmatpush3.bf16.msra.mxu1 %v2205_v36 }
 0x8b8   :  { %v1914_v37 = vpop.f32.mrb[12].mxu1  ;;  %v1925_v38 = vpop.f32.mrb[16].mxu0 }
 0x8b9   :  { %v1263_v39 = vmul.f32 %v1925_v38, %v1914_v37  ;;  %v1174_v40 = vpop.f32.mrb[13].mxu1  ;;  %v1253_v43 = vpop.f32.mrb[17].mxu0 }
 0x8ba   :  { %v1262_v44 = vmul.f32 %v1253_v43, %v1174_v40 }
 0x8bc   :  { %1958 = vmatprep.mubr.f32.mxu1 %v1262_v44 }
 0x8bd   :  { %1959 = vmatmul.mubr.f32.vlgmr.msra.gmra.mrb[14].mxu1 %v1263_v39 }
 0x8c0   :  { %v1971_v45 = vpop.f32.mrb[18].mxu0 }
 0x8c1   :  { %v1431_v46 = vpop.f32.mrb[19].mxu0 }
 0x990   :  { %v1960_v47 = vpop.f32.mrb[14].mxu1 }
 0x991   :  { %2235 = vlog2.f32 %v1960_v47  ;;  %v1346_v48 = vpop.f32.mrb[15].mxu1 }
 0x992   :  { %2237 = vlog2.f32 %v1346_v48 }
 0x99b   :  { %v2236_v49 = vpop.eup %2235 }
 0x99c   :  { %v2238_v50 = vpop.eup %2237  ;;  %v1443_v51 = vmul.f32 0.6931472, %v2236_v49 }
 0x99d   :  { %v1441_v52 = vmul.f32 0.6931472, %v2238_v50 }
 0x99e   :  { %v1445_v53 = vadd.f32 %v1971_v45, %v1443_v51 }
 0x99f   :  { %v1444_v54 = vadd.f32 %v1441_v52, %v1431_v46 }
 0x9a0   :  { %v1450_v56 = vsel %vm1446_vm6, %v1445_v53, -inf }
 0x9a1   :  { %v1447_v55 = vsel %vm1446_vm6, %v1444_v54, -inf }
 0x9a2   :  { %1448 = vmax.xlane.f32.xlu0 %v1447_v55 }
 0x9a6   :  { %1451 = vmax.xlane.f32.xlu0 %v1450_v56 }
 0xa2f   :  { %v1449_v60 = vpop.xlane.xlu0 %1448 }
 0xa30   :  { %v1453_v61 = vsub.f32 %v1444_v54, %v1449_v60 }
 0xa32   :  { %v1455_v62 = vmul.f32 1.442695, %v1453_v61 }
 0xa33   :  { %v1452_v63 = vpop.xlane.xlu0 %1451 }
 0xa34   :  { %2239 = vpow2.f32 %v1455_v62  ;;  %v1454_v0 = vsub.f32 %v1445_v53, %v1452_v63 }
 0xa36   :  { %v1457_v1 = vmul.f32 1.442695, %v1454_v0 }
 0xa38   :  { %2241 = vpow2.f32 %v1457_v1 }
 0xa3e   :  { %v2240_v2 = vpop.eup %2239 }
 0xa3f   :  { %1976 = vmatprep.mubr.msk.f32.mxu0 %vm1446_vm6, %v2240_v2 }
 0xa42   :  { %v2242_v3 = vpop.eup %2241 }
 0xa43   :  { %1977 = vmatmul.mubr.msk.f32.vlgmr.msra.gmra.mrb[20].mxu0 %vm1446_vm6, %v2242_v3 }
 0xb16   :  { %v1978_v6 = vpop.f32.mrb[20].mxu0 }
 0xb17   :  { %2243 = vlog2.f32 %v1978_v6  ;;  %v1533_v7 = vpop.f32.mrb[21].mxu0 }
 0xb18   :  { %2245 = vlog2.f32 %v1533_v7 }
 0xb21   :  { %v2244_v8 = vpop.eup %2243 }
 0xb22   :  { %v2246_v9 = vpop.eup %2245  ;;  %v1545_v5 = vmul.f32 0.6931472, %v2244_v8 }
 0xb23   :  { %v1543_v4 = vmul.f32 0.6931472, %v2246_v9 }
 0xb24   :  { %v1547_v41 = vadd.f32 %v1545_v5, %v1452_v63 }
 0xb25   :  { %v1546_v42 = vadd.f32 %v1543_v4, %v1449_v60 }
 0xb26   :  { %1550 = vst.msk [vmem:[%s2863_s13 + $0x8] sm:$0xff] %vm1548_vm7, %v1547_v41 }
 0xb27   :  { %1549 = vst.msk [vmem:[%s2863_s13] sm:$0xff] %vm1548_vm7, %v1546_v42 }

</bundles_post_ra>
